<compile_context>
chip_gen: v7x
topology: tpu7x:2x2x1
jax: 0.10.0
libtpu: 0.0.40
codegen_flags: <defaults>
</compile_context>

<pallas_src>
import functools
import math

import jax
import jax.numpy as jnp
from jax.experimental import pallas as pl
from jax.experimental.pallas import tpu as pltpu


# ----------------------------------------------------------------------------
# Fused kernel: out = relu( relu(x@W1 + b1) @ W2 + b2 + shortcut(x) )
# ----------------------------------------------------------------------------
def _residual_block_kernel(has_proj, compute_dtype,
                           x_ref, w1_ref, b1_ref, w2_ref, b2_ref, *rest):
    if has_proj:
        ws_ref, bs_ref, o_ref = rest
    else:
        (o_ref,) = rest

    x = x_ref[...]                               # (tm, Kp) f32
    xc = x.astype(compute_dtype)

    h = jnp.dot(xc, w1_ref[...], preferred_element_type=jnp.float32)
    h = jnp.maximum(h + b1_ref[...], 0.0)        # (tm, Hp) f32

    y = jnp.dot(h.astype(compute_dtype), w2_ref[...],
                preferred_element_type=jnp.float32) + b2_ref[...]

    if has_proj:
        y = y + jnp.dot(xc, ws_ref[...],
                        preferred_element_type=jnp.float32) + bs_ref[...]
    else:
        y = y + x                                # identity shortcut (f32)

    o_ref[...] = jnp.maximum(y, 0.0).astype(o_ref.dtype)


# ----------------------------------------------------------------------------
# Wrapper
# ----------------------------------------------------------------------------
def _round_up(x, m):
    return (x + m - 1) // m * m


def _pad2(a, rows, cols):
    return jnp.pad(a, ((0, rows - a.shape[0]), (0, cols - a.shape[1])))


@functools.partial(jax.jit, static_argnames=("tm", "compute_dtype"))
def residual_block_forward(x, params, *, tm=256, compute_dtype=jnp.float32):
    """x: (M, input_dim) f32.  params in PyTorch (out_features, in_features)
    layout: w1,b1,w2,b2 and optionally ws,bs (shortcut Linear)."""
    M, Din = x.shape
    H = params["b1"].shape[0]
    Dout = params["b2"].shape[0]
    has_proj = "ws" in params
    if not has_proj:
        assert Din == Dout, "identity shortcut requires input_dim == output_dim"

    LANE = 128
    Kp = _round_up(Din, LANE)
    Hp = _round_up(H, LANE)
    Np = _round_up(Dout, LANE)
    tm_eff = min(_round_up(tm, 8), _round_up(M, 8))
    Mp = _round_up(M, tm_eff)

    # Parameter prep (pad to lane multiples, transpose to (in, out), cast).
    # Cheap O(params) glue; for a hot training loop it could be hoisted and
    # done once.
    x_p = _pad2(x.astype(jnp.float32), Mp, Kp)
    w1 = _pad2(params["w1"].T, Kp, Hp).astype(compute_dtype)
    b1 = _pad2(params["b1"].reshape(1, -1).astype(jnp.float32), 1, Hp)
    w2 = _pad2(params["w2"].T, Hp, Np).astype(compute_dtype)
    b2 = _pad2(params["b2"].reshape(1, -1).astype(jnp.float32), 1, Np)

    inputs = [x_p, w1, b1, w2, b2]
    in_specs = [
        pl.BlockSpec((tm_eff, Kp), lambda i: (i, 0)),   # x tile
        pl.BlockSpec((Kp, Hp), lambda i: (0, 0)),       # W1 (resident)
        pl.BlockSpec((1, Hp), lambda i: (0, 0)),        # b1
        pl.BlockSpec((Hp, Np), lambda i: (0, 0)),       # W2 (resident)
        pl.BlockSpec((1, Np), lambda i: (0, 0)),        # b2
    ]
    if has_proj:
        ws = _pad2(params["ws"].T, Kp, Np).astype(compute_dtype)
        bs = _pad2(params["bs"].reshape(1, -1).astype(jnp.float32), 1, Np)
        inputs += [ws, bs]
        in_specs += [
            pl.BlockSpec((Kp, Np), lambda i: (0, 0)),   # W_shortcut
            pl.BlockSpec((1, Np), lambda i: (0, 0)),    # b_shortcut
        ]

    kernel = functools.partial(_residual_block_kernel, has_proj, compute_dtype)
    out = pl.pallas_call(
        kernel,
        out_shape=jax.ShapeDtypeStruct((Mp, Np), jnp.float32),
        grid=(Mp // tm_eff,),
        in_specs=in_specs,
        out_specs=pl.BlockSpec((tm_eff, Np), lambda i: (i, 0)),
        compiler_params=pltpu.CompilerParams(
            dimension_semantics=("parallel",)),
    )(*inputs)
    return out[:M, :Dout]


# ----------------------------------------------------------------------------
# Parameters (PyTorch nn.Linear default init) + pure-JAX reference
# ----------------------------------------------------------------------------
def init_residual_block_params(key, input_dim, hidden_dim, output_dim):
    def linear_init(k, fan_out, fan_in):
        kw, kb = jax.random.split(k)
        bound = 1.0 / math.sqrt(fan_in)
        w = jax.random.uniform(kw, (fan_out, fan_in), jnp.float32, -bound, bound)
        b = jax.random.uniform(kb, (fan_out,), jnp.float32, -bound, bound)
        return w, b

    k1, k2, k3 = jax.random.split(key, 3)
    w1, b1 = linear_init(k1, hidden_dim, input_dim)
    w2, b2 = linear_init(k2, output_dim, hidden_dim)
    params = {"w1": w1, "b1": b1, "w2": w2, "b2": b2}
    if input_dim != output_dim:
        ws, bs = linear_init(k3, output_dim, input_dim)
        params["ws"] = ws
        params["bs"] = bs
    return params


def _reference_forward(params, x):
    prec = jax.lax.Precision.HIGHEST

    def linear(v, w, b):
        return jnp.dot(v, w.T, precision=prec) + b

    h = jnp.maximum(linear(x, params["w1"], params["b1"]), 0.0)
    y = linear(h, params["w2"], params["b2"])
    if "ws" in params:
        y = y + linear(x, params["ws"], params["bs"])
    else:
        y = y + x
    return jnp.maximum(y, 0.0)


# ----------------------------------------------------------------------------
if __name__ == "__main__":
    key = jax.random.PRNGKey(0)
    kp1, kp2, kx1, kx2 = jax.random.split(key, 4)

    # Case A: input_dim != output_dim -> Linear shortcut.
    B, Din, H, Dout = 2, 16, 32, 24
    params_a = init_residual_block_params(kp1, Din, H, Dout)
    x_a = jax.random.normal(kx1, (B, Din), jnp.float32)

    out_a = jax.block_until_ready(residual_block_forward(x_a, params_a))
    ref_a = _reference_forward(params_a, x_a)
    assert out_a.shape == (B, Dout), out_a.shape
    assert jnp.allclose(out_a, ref_a, atol=1e-4, rtol=1e-4)

    # Case B: input_dim == output_dim -> identity shortcut.
    B2, Din2, H2, Dout2 = 2, 32, 48, 32
    params_b = init_residual_block_params(kp2, Din2, H2, Dout2)
    x_b = jax.random.normal(kx2, (B2, Din2), jnp.float32)

    out_b = jax.block_until_ready(residual_block_forward(x_b, params_b))
    ref_b = _reference_forward(params_b, x_b)
    assert out_b.shape == (B2, Dout2), out_b.shape
    assert jnp.allclose(out_b, ref_b, atol=1e-4, rtol=1e-4)

    # bf16 MXU path (performance config): f32 accumulation, looser tolerance.
    out_bf = jax.block_until_ready(
        residual_block_forward(x_a, params_a, compute_dtype=jnp.bfloat16))
    assert jnp.allclose(out_bf, ref_a, atol=5e-2, rtol=5e-2)

    print("KERNEL_OK")
</pallas_src>

<mosaic_0001>
module attributes {stable_mosaic.version = 11 : i64} {
  func.func @_residual_block_kernel(%arg0: i32, %arg1: memref<8x128xf32, #tpu.memory_space<vmem>>, %arg2: memref<128x128xf32, #tpu.memory_space<vmem>>, %arg3: memref<1x128xf32, #tpu.memory_space<vmem>>, %arg4: memref<128x128xf32, #tpu.memory_space<vmem>>, %arg5: memref<1x128xf32, #tpu.memory_space<vmem>>, %arg6: memref<128x128xf32, #tpu.memory_space<vmem>>, %arg7: memref<1x128xf32, #tpu.memory_space<vmem>>, %arg8: memref<8x128xf32, #tpu.memory_space<vmem>>) attributes {dimension_semantics = [#tpu.dimension_semantics<parallel>], iteration_bounds = array<i64: 1>, scalar_prefetch = 0 : i64, scratch_operands = 0 : i64, tpu.core_type = #tpu.core_type<tc>, window_params = [{transform_indices = @transform_0, window_bounds = array<i64: 8, 128>}, {pipeline_mode = #tpu.pipeline_mode<synchronous>, transform_indices = @transform_1, window_bounds = array<i64: 128, 128>}, {pipeline_mode = #tpu.pipeline_mode<synchronous>, transform_indices = @transform_2, window_bounds = array<i64: 1, 128>}, {pipeline_mode = #tpu.pipeline_mode<synchronous>, transform_indices = @transform_3, window_bounds = array<i64: 128, 128>}, {pipeline_mode = #tpu.pipeline_mode<synchronous>, transform_indices = @transform_4, window_bounds = array<i64: 1, 128>}, {pipeline_mode = #tpu.pipeline_mode<synchronous>, transform_indices = @transform_5, window_bounds = array<i64: 128, 128>}, {pipeline_mode = #tpu.pipeline_mode<synchronous>, transform_indices = @transform_6, window_bounds = array<i64: 1, 128>}, {transform_indices = @transform_7, window_bounds = array<i64: 8, 128>}]} {
    %c0 = arith.constant 0 : index
    %c0_0 = arith.constant 0 : index
    %0 = vector.load %arg1[%c0, %c0_0] : memref<8x128xf32, #tpu.memory_space<vmem>>, vector<8x128xf32>
    %c0_1 = arith.constant 0 : index
    %c0_2 = arith.constant 0 : index
    %1 = vector.load %arg2[%c0_1, %c0_2] : memref<128x128xf32, #tpu.memory_space<vmem>>, vector<128x128xf32>
    %cst = arith.constant dense<0.000000e+00> : vector<8x128xf32>
    %2 = tpu.matmul %0, %1, %cst {dimension_numbers = #tpu.dot_dimension_numbers<[1], [0], [0], [1], [0, 0, 1, 1], [], []>} : vector<8x128xf32>, vector<128x128xf32>, vector<8x128xf32> -> vector<8x128xf32>
    %c0_3 = arith.constant 0 : index
    %c0_4 = arith.constant 0 : index
    %3 = vector.load %arg3[%c0_3, %c0_4] : memref<1x128xf32, #tpu.memory_space<vmem>>, vector<1x128xf32>
    %4 = vector.broadcast %3 : vector<1x128xf32> to vector<8x128xf32>
    %5 = arith.addf %2, %4 : vector<8x128xf32>
    %cst_5 = arith.constant 0.000000e+00 : f32
    %6 = vector.broadcast %cst_5 : f32 to vector<8x128xf32>
    %7 = arith.maximumf %5, %6 : vector<8x128xf32>
    %c0_6 = arith.constant 0 : index
    %c0_7 = arith.constant 0 : index
    %8 = vector.load %arg4[%c0_6, %c0_7] : memref<128x128xf32, #tpu.memory_space<vmem>>, vector<128x128xf32>
    %cst_8 = arith.constant dense<0.000000e+00> : vector<8x128xf32>
    %9 = tpu.matmul %7, %8, %cst_8 {dimension_numbers = #tpu.dot_dimension_numbers<[1], [0], [0], [1], [0, 0, 1, 1], [], []>} : vector<8x128xf32>, vector<128x128xf32>, vector<8x128xf32> -> vector<8x128xf32>
    %c0_9 = arith.constant 0 : index
    %c0_10 = arith.constant 0 : index
    %10 = vector.load %arg5[%c0_9, %c0_10] : memref<1x128xf32, #tpu.memory_space<vmem>>, vector<1x128xf32>
    %11 = vector.broadcast %10 : vector<1x128xf32> to vector<8x128xf32>
    %12 = arith.addf %9, %11 : vector<8x128xf32>
    %c0_11 = arith.constant 0 : index
    %c0_12 = arith.constant 0 : index
    %13 = vector.load %arg6[%c0_11, %c0_12] : memref<128x128xf32, #tpu.memory_space<vmem>>, vector<128x128xf32>
    %cst_13 = arith.constant dense<0.000000e+00> : vector<8x128xf32>
    %14 = tpu.matmul %0, %13, %cst_13 {dimension_numbers = #tpu.dot_dimension_numbers<[1], [0], [0], [1], [0, 0, 1, 1], [], []>} : vector<8x128xf32>, vector<128x128xf32>, vector<8x128xf32> -> vector<8x128xf32>
    %15 = arith.addf %12, %14 : vector<8x128xf32>
    %c0_14 = arith.constant 0 : index
    %c0_15 = arith.constant 0 : index
    %16 = vector.load %arg7[%c0_14, %c0_15] : memref<1x128xf32, #tpu.memory_space<vmem>>, vector<1x128xf32>
    %17 = vector.broadcast %16 : vector<1x128xf32> to vector<8x128xf32>
    %18 = arith.addf %15, %17 : vector<8x128xf32>
    %cst_16 = arith.constant 0.000000e+00 : f32
    %19 = vector.broadcast %cst_16 : f32 to vector<8x128xf32>
    %20 = arith.maximumf %18, %19 : vector<8x128xf32>
    %c0_17 = arith.constant 0 : index
    %c0_18 = arith.constant 0 : index
    %21 = vector.load %arg8[%c0_17, %c0_18] : memref<8x128xf32, #tpu.memory_space<vmem>>, vector<8x128xf32>
    tpu.vector_store %arg8[%c0_17, %c0_18], %20 {strides = array<i32>} : memref<8x128xf32, #tpu.memory_space<vmem>>, vector<8x128xf32>,
    return
  }
  func.func @transform_0(%arg0: i32) -> (i32, i32) {
    %c0_i32 = arith.constant 0 : i32
    %c0_i32_0 = arith.constant 0 : i32
    return %arg0, %c0_i32 : i32, i32
  }
  func.func @transform_1(%arg0: i32) -> (i32, i32) {
    %c0_i32 = arith.constant 0 : i32
    %c0_i32_0 = arith.constant 0 : i32
    %c0_i32_1 = arith.constant 0 : i32
    return %c0_i32, %c0_i32_0 : i32, i32
  }
  func.func @transform_2(%arg0: i32) -> (i32, i32) {
    %c0_i32 = arith.constant 0 : i32
    %c0_i32_0 = arith.constant 0 : i32
    %c0_i32_1 = arith.constant 0 : i32
    return %c0_i32, %c0_i32_0 : i32, i32
  }
  func.func @transform_3(%arg0: i32) -> (i32, i32) {
    %c0_i32 = arith.constant 0 : i32
    %c0_i32_0 = arith.constant 0 : i32
    %c0_i32_1 = arith.constant 0 : i32
    return %c0_i32, %c0_i32_0 : i32, i32
  }
  func.func @transform_4(%arg0: i32) -> (i32, i32) {
    %c0_i32 = arith.constant 0 : i32
    %c0_i32_0 = arith.constant 0 : i32
    %c0_i32_1 = arith.constant 0 : i32
    return %c0_i32, %c0_i32_0 : i32, i32
  }
  func.func @transform_5(%arg0: i32) -> (i32, i32) {
    %c0_i32 = arith.constant 0 : i32
    %c0_i32_0 = arith.constant 0 : i32
    %c0_i32_1 = arith.constant 0 : i32
    return %c0_i32, %c0_i32_0 : i32, i32
  }
  func.func @transform_6(%arg0: i32) -> (i32, i32) {
    %c0_i32 = arith.constant 0 : i32
    %c0_i32_0 = arith.constant 0 : i32
    %c0_i32_1 = arith.constant 0 : i32
    return %c0_i32, %c0_i32_0 : i32, i32
  }
  func.func @transform_7(%arg0: i32) -> (i32, i32) {
    %c0_i32 = arith.constant 0 : i32
    %c0_i32_0 = arith.constant 0 : i32
    return %arg0, %c0_i32 : i32, i32
  }
}

</mosaic_0001>

<bundles_post_ra>
// kernel: residual_block_forward.1
= control target key start
LH: loop header
LB: loop body
LE: loop exit
PB: predicated region body
PF: predicated region fallthrough
CT: control target
= control target key end

     0   :  { %v549_v0 = vmov 0.0|0.0   ;;  %vm550_vm0 = vmmov 0   ;;  %v551_v4 = vmov 0.0   ;;  %s781_s1 = inlined_call_operand.vmem [shape: f32[128,128], index: 1, kind: input, shape index: {}]   ;;  %s782_s3 = inlined_call_operand.vmem [shape: f32[128,128], index: 3, kind: input, shape index: {}]   ;;  %s783_s5 = inlined_call_operand.vmem [shape: f32[128,128], index: 5, kind: input, shape index: {}]   ;;  %s784_s0 = inlined_call_operand.vmem [shape: f32[8,128], index: 0, kind: input, shape index: {}]   ;;  %s785_s2 = inlined_call_operand.vmem [shape: f32[1,128], index: 2, kind: input, shape index: {}]   ;;  %s786_s4 = inlined_call_operand.vmem [shape: f32[1,128], index: 4, kind: input, shape index: {}]   ;;  %s787_s6 = inlined_call_operand.vmem [shape: f32[1,128], index: 6, kind: input, shape index: {}]   ;;  %s788_s7 = inlined_call_operand.vmem [shape: f32[8,128], index: 7, kind: output, shape index: {}]  }
   0x1   :  { %474 = vmatprep.subr.bf16.mxu0 %v549_v0  ;;  %v27_v1 = vld [vmem:[%s781_s1] sm:$0xff]  ;;  %v28_v2 = vld [vmem:[%s781_s1 + $0x8] sm:$0xff]  ;;  %v29_v3 = vld [vmem:[%s781_s1 + $0x10] sm:$0xff]  ;;  %401 = vmatprep.mubr.msk.f32.mxu0 %vm550_vm0, %v551_v4 }
   0x2   :  { %v475_v5 = vpack.c.bf16 %v28_v2, %v27_v1  ;;  %v30_v6 = vld [vmem:[%s781_s1 + $0x18] sm:$0xff]  ;;  %498 = vmatprep.subr.bf16.mxu1 %v549_v0  ;;  %436 = vmatprep.mubr.msk.f32.mxu1 %vm550_vm0, %v551_v4  ;;  %v31_v8 = vld [vmem:[%s781_s1 + $0x20] sm:$0xff]  ;;  %v32_v9 = vld [vmem:[%s781_s1 + $0x28] sm:$0xff] }
   0x3   :  { %v478_v7 = vpack.c.bf16 %v30_v6, %v29_v3  ;;  %v121_v10 = vld [vmem:[%s782_s3] sm:$0xff]  ;;  %v122_v11 = vld [vmem:[%s782_s3 + $0x8] sm:$0xff]  ;;  %v481_v12 = vpack.c.bf16 %v32_v9, %v31_v8  ;;  %v123_v14 = vld [vmem:[%s782_s3 + $0x10] sm:$0xff] }
   0x4   :  { %476 = vmatpush3.bf16.msra.mxu0 %v475_v5  ;;  %v499_v13 = vpack.c.bf16 %v122_v11, %v121_v10  ;;  %v124_v15 = vld [vmem:[%s782_s3 + $0x18] sm:$0xff]  ;;  %v33_v16 = vld [vmem:[%s781_s1 + $0x30] sm:$0xff]  ;;  %v125_v19 = vld [vmem:[%s782_s3 + $0x20] sm:$0xff] }
   0x5   :  { %477 = vmatprep.subr.bf16.mxu0 %v549_v0  ;;  %v34_v17 = vld [vmem:[%s781_s1 + $0x38] sm:$0xff]  ;;  %v502_v18 = vpack.c.bf16 %v124_v15, %v123_v14  ;;  %v126_v20 = vld [vmem:[%s782_s3 + $0x28] sm:$0xff]  ;;  %v35_v22 = vld [vmem:[%s781_s1 + $0x40] sm:$0xff] }
   0x6   :  { %500 = vmatpush3.bf16.msra.mxu1 %v499_v13  ;;  %v484_v21 = vpack.c.bf16 %v34_v17, %v33_v16  ;;  %v36_v23 = vld [vmem:[%s781_s1 + $0x48] sm:$0xff]  ;;  %v505_v24 = vpack.c.bf16 %v126_v20, %v125_v19  ;;  %v127_v25 = vld [vmem:[%s782_s3 + $0x30] sm:$0xff]  ;;  %v128_v26 = vld [vmem:[%s782_s3 + $0x38] sm:$0xff] }
   0x7   :  { %501 = vmatprep.subr.bf16.mxu1 %v549_v0  ;;  %v487_v27 = vpack.c.bf16 %v36_v23, %v35_v22  ;;  %v37_v28 = vld [vmem:[%s781_s1 + $0x50] sm:$0xff]  ;;  %v38_v29 = vld [vmem:[%s781_s1 + $0x58] sm:$0xff]  ;;  %v508_v30 = vpack.c.bf16 %v128_v26, %v127_v25  ;;  %v129_v31 = vld [vmem:[%s782_s3 + $0x40] sm:$0xff] }
   0x8   :  { %479 = vmatpush3.bf16.msra.mxu0 %v478_v7  ;;  %v130_v32 = vld [vmem:[%s782_s3 + $0x48] sm:$0xff]  ;;  %v490_v33 = vpack.c.bf16 %v38_v29, %v37_v28  ;;  %v39_v34 = vld [vmem:[%s781_s1 + $0x60] sm:$0xff]  ;;  %v131_v37 = vld [vmem:[%s782_s3 + $0x50] sm:$0xff] }
   0x9   :  { %480 = vmatprep.subr.bf16.mxu0 %v549_v0  ;;  %v40_v35 = vld [vmem:[%s781_s1 + $0x68] sm:$0xff]  ;;  %v511_v36 = vpack.c.bf16 %v130_v32, %v129_v31  ;;  %v132_v38 = vld [vmem:[%s782_s3 + $0x58] sm:$0xff]  ;;  %v41_v40 = vld [vmem:[%s781_s1 + $0x70] sm:$0xff] }
   0xa   :  { %503 = vmatpush3.bf16.msra.mxu1 %v502_v18  ;;  %v493_v39 = vpack.c.bf16 %v40_v35, %v39_v34  ;;  %v42_v41 = vld [vmem:[%s781_s1 + $0x78] sm:$0xff]  ;;  %v514_v42 = vpack.c.bf16 %v132_v38, %v131_v37  ;;  %v133_v43 = vld [vmem:[%s782_s3 + $0x60] sm:$0xff]  ;;  %v134_v44 = vld [vmem:[%s782_s3 + $0x68] sm:$0xff] }
   0xb   :  { %504 = vmatprep.subr.bf16.mxu1 %v549_v0  ;;  %v496_v45 = vpack.c.bf16 %v42_v41, %v41_v40  ;;  %v214_v46 = vld [vmem:[%s783_s5] sm:$0xff]  ;;  %v215_v47 = vld [vmem:[%s783_s5 + $0x8] sm:$0xff]  ;;  %v517_v48 = vpack.c.bf16 %v134_v44, %v133_v43  ;;  %v216_v51 = vld [vmem:[%s783_s5 + $0x10] sm:$0xff] }
   0xc   :  { %482 = vmatpush3.bf16.msra.mxu0 %v481_v12  ;;  %v26_v49 = vld [vmem:[%s784_s0] sm:$0xff]  ;;  %v523_v50 = vpack.c.bf16 %v215_v47, %v214_v46  ;;  %v217_v52 = vld [vmem:[%s783_s5 + $0x18] sm:$0xff]  ;;  %v219_v55 = vld [vmem:[%s783_s5 + $0x28] sm:$0xff] }
   0xd   :  { %483 = vmatprep.subr.bf16.mxu0 %v549_v0  ;;  %v526_v53 = vpack.c.bf16 %v217_v52, %v216_v51  ;;  %v218_v54 = vld [vmem:[%s783_s5 + $0x20] sm:$0xff]  ;;  %v220_v57 = vld [vmem:[%s783_s5 + $0x30] sm:$0xff]  ;;  %v221_v58 = vld [vmem:[%s783_s5 + $0x38] sm:$0xff] }
   0xe   :  { %506 = vmatpush3.bf16.msra.mxu1 %v505_v24  ;;  %v529_v56 = vpack.c.bf16 %v219_v55, %v218_v54  ;;  %v532_v59 = vpack.c.bf16 %v221_v58, %v220_v57  ;;  %v222_v60 = vld [vmem:[%s783_s5 + $0x40] sm:$0xff]  ;;  %v223_v61 = vld [vmem:[%s783_s5 + $0x48] sm:$0xff]  ;;  %v224_v63 = vld [vmem:[%s783_s5 + $0x50] sm:$0xff] }
   0xf   :  { %507 = vmatprep.subr.bf16.mxu1 %v549_v0  ;;  %v535_v62 = vpack.c.bf16 %v223_v61, %v222_v60  ;;  %v225_v1 = vld [vmem:[%s783_s5 + $0x58] sm:$0xff]  ;;  %v226_v3 = vld [vmem:[%s783_s5 + $0x60] sm:$0xff]  ;;  %v135_v6 = vld [vmem:[%s782_s3 + $0x70] sm:$0xff] }
  0x10   :  { %485 = vmatpush3.bf16.msra.mxu0 %v484_v21  ;;  %v538_v2 = vpack.c.bf16 %v225_v1, %v224_v63  ;;  %v136_v7 = vld [vmem:[%s782_s3 + $0x78] sm:$0xff]  ;;  %v228_v9 = vld [vmem:[%s783_s5 + $0x70] sm:$0xff]  ;;  %v316_v18 = vld [vmem:[%s786_s4] ss:$0 sm:$0xff] }
  0x11   :  { %486 = vmatprep.subr.bf16.mxu0 %v549_v0  ;;  %v520_v8 = vpack.c.bf16 %v136_v7, %v135_v6  ;;  %v229_v10 = vld [vmem:[%s783_s5 + $0x78] sm:$0xff]  ;;  %v317_v22 = vld [vmem:[%s787_s6] ss:$0 sm:$0xff] }
  0x12   :  { %509 = vmatpush3.bf16.msra.mxu1 %v508_v30  ;;  %v544_v11 = vpack.c.bf16 %v229_v10, %v228_v9 }
  0x13   :  { %510 = vmatprep.subr.bf16.mxu1 %v549_v0 }
  0x14   :  { %488 = vmatpush3.bf16.msra.mxu0 %v487_v27 }
  0x15   :  { %489 = vmatprep.subr.bf16.mxu0 %v549_v0 }
  0x16   :  { %512 = vmatpush3.bf16.msra.mxu1 %v511_v36 }
  0x17   :  { %513 = vmatprep.subr.bf16.mxu1 %v549_v0 }
  0x18   :  { %491 = vmatpush3.bf16.msra.mxu0 %v490_v33 }
  0x19   :  { %492 = vmatprep.subr.bf16.mxu0 %v549_v0 }
  0x1a   :  { %515 = vmatpush3.bf16.msra.mxu1 %v514_v42 }
  0x1b   :  { %516 = vmatprep.subr.bf16.mxu1 %v549_v0 }
  0x1c   :  { %494 = vmatpush3.bf16.msra.mxu0 %v493_v39 }
  0x1d   :  { %495 = vmatprep.subr.bf16.mxu0 %v549_v0 }
  0x1e   :  { %518 = vmatpush3.bf16.msra.mxu1 %v517_v48 }
  0x1f   :  { %519 = vmatprep.subr.bf16.mxu1 %v549_v0 }
  0x20   :  { %497 = vmatpush3.bf16.msra.mxu0 %v496_v45 }
  0x21   :  { %522 = vmatprep.subr.bf16.mxu0 %v549_v0 }
  0x22   :  { %521 = vmatpush3.bf16.msra.mxu1 %v520_v8 }
  0x23   :  { %402 = vmatmul.mubr.f32.vlgmr.msra.gmra.mrb[0].mxu0 %v26_v49 }
  0x24   :  { %524 = vmatpush3.bf16.msra.mxu0 %v523_v50  ;;  %471 = vmatprep.mubr.msk.f32.mxu0 %vm550_vm0, %v551_v4  ;;  %v227_v4 = vld [vmem:[%s783_s5 + $0x68] sm:$0xff] }
  0x25   :  { %525 = vmatprep.subr.bf16.mxu0 %v549_v0  ;;  %v541_v5 = vpack.c.bf16 %v227_v4, %v226_v3 }
  0x28   :  { %527 = vmatpush3.bf16.msra.mxu0 %v526_v53 }
  0x29   :  { %528 = vmatprep.subr.bf16.mxu0 %v549_v0 }
  0x2c   :  { %530 = vmatpush3.bf16.msra.mxu0 %v529_v56 }
  0x2d   :  { %531 = vmatprep.subr.bf16.mxu0 %v549_v0 }
  0x30   :  { %533 = vmatpush3.bf16.msra.mxu0 %v532_v59 }
  0x31   :  { %534 = vmatprep.subr.bf16.mxu0 %v549_v0 }
  0x34   :  { %536 = vmatpush3.bf16.msra.mxu0 %v535_v62 }
  0x35   :  { %537 = vmatprep.subr.bf16.mxu0 %v549_v0 }
  0x38   :  { %539 = vmatpush3.bf16.msra.mxu0 %v538_v2 }
  0x39   :  { %540 = vmatprep.subr.bf16.mxu0 %v549_v0 }
  0x3c   :  { %542 = vmatpush3.bf16.msra.mxu0 %v541_v5 }
  0x3d   :  { %543 = vmatprep.subr.bf16.mxu0 %v549_v0  ;;  %v315_v0 = vld [vmem:[%s785_s2] ss:$0 sm:$0xff] }
  0x40   :  { %545 = vmatpush3.bf16.msra.mxu0 %v544_v11 }
  0x43   :  { %472 = vmatmul.mubr.f32.vlgmr.msra.gmra.mrb[2].mxu0 %v26_v49 }
  0xf6   :  { %v116_v12 = vpop.f32.mrb[0].mxu0 }
  0xf7   :  { %v117_v13 = vadd.f32 %v315_v0, %v116_v12  ;;  %v403_v14 = vpop.f32.mrb[1].mxu0 }
  0xf9   :  { %v120_v15 = vmax.f32 %v117_v13, 0.0 }
  0xfb   :  { %437 = vmatmul.mubr.f32.vlgmr.msra.gmra.mrb[0].mxu1 %v120_v15 }
 0x116   :  { %v296_v16 = vpop.f32.mrb[2].mxu0 }
 0x117   :  { %v473_v17 = vpop.f32.mrb[3].mxu0 }
 0x1ce   :  { %v210_v19 = vpop.f32.mrb[0].mxu1 }
 0x1cf   :  { %v211_v20 = vadd.f32 %v316_v18, %v210_v19  ;;  %v438_v21 = vpop.f32.mrb[1].mxu1 }
 0x1d1   :  { %v300_v23 = vadd.f32 %v296_v16, %v211_v20 }
 0x1d3   :  { %v308_v24 = vadd.f32 %v317_v22, %v300_v23 }
 0x1d5   :  { %v309_v25 = vmax.f32 %v308_v24, 0.0 }
 0x1d7   :  { %310 = vst [vmem:[%s788_s7] sm:$0xff] %v309_v25 }

</bundles_post_ra>
